<compile_context>
chip_gen: v7x
topology: tpu7x:2x2x1
jax: 0.10.0
libtpu: 0.0.40
codegen_flags: <defaults>
</compile_context>

<pallas_src>
import jax
import jax.numpy as jnp
import numpy as np
from jax.experimental import pallas as pl
from jax.experimental.pallas import tpu as pltpu

# ---- module hyper-parameters (small shapes consistent with the torch globals) ----
N_EMBD = 100                       # n_embd
SQRT_D = 10                        # int(sqrt(n_embd)); n_embd == SQRT_D**2 (required by the views)
BLOCK_SIZE = 8                     # block_size == T
BATCH_SIZE = 2                     # batch_size == B
N_HEAD = SQRT_D // 5               # 2
HEAD_SIZE = SQRT_D // N_HEAD       # 5  (N_HEAD * HEAD_SIZE == SQRT_D -> head concat == joint matmul)
EPS = 1e-5

B, T, S, C = BATCH_SIZE, BLOCK_SIZE, SQRT_D, N_EMBD
R = B * T                          # 16 rows: r = b*T + t
H4 = 4 * S                         # FeedForward hidden width


# ----------------------------- single fused Pallas kernel -----------------------------

def fused_block_kernel(xg_ref, wg_ref, wqkv_ref, wp_ref, w1_ref, w2_ref, wb_ref,
                       vec_ref, o_ref, flat_scratch):
    # xg_ref, wg_ref : (R, S*S) = (16, 100)  feebler operands pre-permuted so that
    #                  row = (b, t') and lane = j*S + s'  (j is the reduced axis)
    # wqkv_ref: (S, 3S)  fused q|k|v weights;  wp_ref: (S, S) proj weight
    # w1_ref: (S, 4S), w2_ref: (4S, S)  FeedForward weights
    # wb_ref : (S, S*T) = (10, 80)  booster weight (row i, lane m = j*T + t)
    # vec_ref: (1, 100) packed [ln1_g|ln1_b|ln2_g|ln2_b|proj_b|ffn_b2|ffn_b1(40)]
    # o_ref  : (B, T*C) = (2, 800) lane-dense output
    # flat_scratch: (B, T*S) = (2, 80) VMEM scratch for the final .view flatten
    f32 = jnp.float32

    # ---------- Feebler (+ both torch .view reinterpretations), exact, no relayout ----------
    prod = xg_ref[...] * wg_ref[...]                        # (16, 100)
    y = prod[:, 0:S]
    for j in range(1, S):
        y = y + prod[:, j * S:(j + 1) * S]                  # (16, 10): residual stream, rows=(b,t)

    # ---------- packed per-channel vectors ----------
    vec = vec_ref[...]
    g1, be1 = vec[:, 0:S], vec[:, S:2 * S]
    g2, be2 = vec[:, 2 * S:3 * S], vec[:, 3 * S:4 * S]
    bp, b2 = vec[:, 4 * S:5 * S], vec[:, 5 * S:6 * S]
    b1 = vec[:, 6 * S:6 * S + H4]

    def layer_norm(z, g, b):
        mu = jnp.mean(z, axis=-1, keepdims=True)
        var = jnp.mean((z - mu) ** 2, axis=-1, keepdims=True)
        return (z - mu) * jax.lax.rsqrt(var + EPS) * g + b

    def seg_bcast(a, red):
        # reduce over the T rows of each batch segment (torch dim=1) and broadcast back
        parts = []
        for bb in range(B):
            r = red(a[bb * T:(bb + 1) * T, :], axis=0, keepdims=True)
            parts.append(jnp.broadcast_to(r, (T, a.shape[1])))
        return jnp.concatenate(parts, axis=0)

    # ---------- LayerNorm1 + QuickHead multi-head attention (heads fused) + proj ----------
    xn = layer_norm(y, g1, be1)
    qkv = jnp.dot(xn, wqkv_ref[...], preferred_element_type=f32)       # (16, 30), one MXU push
    q, k, v = qkv[:, 0:S], qkv[:, S:2 * S], qkv[:, 2 * S:3 * S]
    qk = q * seg_bcast(k, jnp.sum)                          # q * collective_k
    mx = seg_bcast(qk, jnp.max)
    e = jnp.exp(qk - mx)
    aw = e / seg_bcast(e, jnp.sum)                          # softmax over T within each batch
    att = seg_bcast(v, jnp.sum) * aw                        # collective_v * attention_weights
    sa = jnp.dot(att, wp_ref[...], preferred_element_type=f32) + bp
    # TODO(synk): nn.Dropout (after proj and inside FeedForward) is eval-mode identity here.
    y1 = y + sa

    # ---------- LayerNorm2 + FeedForward ----------
    x2 = layer_norm(y1, g2, be2)
    h = jnp.maximum(jnp.dot(x2, w1_ref[...], preferred_element_type=f32) + b1, 0.0)
    y2 = y1 + jnp.dot(h, w2_ref[...], preferred_element_type=f32) + b2   # (16, 10)

    # ---------- flatten (B*T, S) -> (B, T*S)  (torch .view) via tiny scratch stores ----------
    for bb in range(B):
        for t in range(T):
            flat_scratch[bb:bb + 1, t * S:(t + 1) * S] = y2[bb * T + t:bb * T + t + 1, :]
    y2f = flat_scratch[...]                                 # (2, 80)

    # ---------- Booster (+ final torch .view): write lane-dense (B, T*C) directly ----------
    wb = wb_ref[...]                                        # (10, 80)
    for i in range(S):
        o_ref[:, i * (S * T):(i + 1) * (S * T)] = y2f * wb[i:i + 1, :]


# ----------------------------- wrapper -----------------------------

def _prepare_inputs(x, p):
    # Feebler operand: permute x so that row=(b,t'), lane=j*S+s' and the reduced axis j
    # maps to 10 adjacent lane-slabs (exactly the torch view (B,S,S,T) + sum(dim=2) + view(B,T,S)).
    xg = (x.reshape(B, S, S, T)          # (b, i, j, t)   torch .view
           .transpose(0, 2, 1, 3)        # (b, j, i, t)
           .reshape(B, S, S * T)         # (b, j, m)      m = i*T + t
           .reshape(B, S, T, S)          # (b, j, t', s') m = t'*S + s'
           .transpose(0, 2, 1, 3)        # (b, t', j, s')
           .reshape(R, S * S))           # (16, 100)
    wg = (p['feebler_w']                 # (i, j, t)
          .transpose(1, 0, 2)            # (j, i, t)
          .reshape(S, S * T)             # (j, m)
          .reshape(S, T, S)              # (j, t', s')
          .transpose(1, 0, 2)            # (t', j, s')
          .reshape(T, S * S))            # (8, 100)
    wg = jnp.concatenate([wg] * B, axis=0)                                # (16, 100)
    wqkv = jnp.concatenate([p['wq'], p['wk'], p['wv']], axis=1)           # (10, 30)
    wb = p['booster_w'].reshape(S, S * T)                                 # (10, 80)
    vec = jnp.concatenate([p['ln1_g'], p['ln1_b'], p['ln2_g'], p['ln2_b'],
                           p['bp'], p['b2'], p['b1']], axis=1)            # (1, 100)
    return xg, wg, wqkv, wb, vec


@jax.jit
def block_forward(x, p):
    xg, wg, wqkv, wb, vec = _prepare_inputs(x, p)
    out_flat = pl.pallas_call(
        fused_block_kernel,
        out_shape=jax.ShapeDtypeStruct((B, T * C), jnp.float32),
        scratch_shapes=[pltpu.VMEM((B, T * S), jnp.float32)],
    )(xg, wg, wqkv, p['wp'], p['w1'], p['w2'], wb, vec)
    return out_flat.reshape(B, T, C)                       # free row-major reinterpretation


# ----------------------------- pure-JAX reference (torch semantics) -----------------------------

def block_ref(x, p):
    def ln(z, g, b):
        mu = z.mean(-1, keepdims=True)
        var = ((z - mu) ** 2).mean(-1, keepdims=True)
        return (z - mu) / jnp.sqrt(var + EPS) * g + b

    d = x.reshape(B, S, S, T)
    y = jnp.sum(d * p['feebler_w'], axis=2).reshape(B, T, S)

    xn = ln(y, p['ln1_g'], p['ln1_b'])
    q = xn @ p['wq']; k = xn @ p['wk']; v = xn @ p['wv']
    qk = q * k.sum(1, keepdims=True)
    aw = jax.nn.softmax(qk, axis=1)
    att = v.sum(1, keepdims=True) * aw
    y1 = y + (att @ p['wp'] + p['bp'])

    x2 = ln(y1, p['ln2_g'], p['ln2_b'])
    y2 = y1 + (jnp.maximum(x2 @ p['w1'] + p['b1'], 0.0) @ p['w2'] + p['b2'])

    yr = y2.reshape(B, S, T)
    return (p['booster_w'][None] * yr[:, None, :, :]).reshape(B, T, C)


# ----------------------------- main -----------------------------

if __name__ == "__main__":
    key = jax.random.PRNGKey(0)
    ks = jax.random.split(key, 16)

    # Deterministic synthetic parameters (shapes from the module __init__;
    # Linear weights stored as (in, out), i.e. transposed vs torch's (out, in)).
    params = {
        'feebler_w': jax.random.normal(ks[0], (S, S, T), jnp.float32),
        'booster_w': jax.random.normal(ks[1], (S, S, T), jnp.float32),
        # per-head key/query/value Linears concatenated along output axis (n_head*head_size == S)
        'wq': 0.3 * jax.random.normal(ks[2], (S, S), jnp.float32),
        'wk': 0.3 * jax.random.normal(ks[3], (S, S), jnp.float32),
        'wv': 0.3 * jax.random.normal(ks[4], (S, S), jnp.float32),
        'wp': 0.3 * jax.random.normal(ks[5], (S, S), jnp.float32),
        'bp': 0.1 * jax.random.normal(ks[6], (1, S), jnp.float32),
        'ln1_g': 1.0 + 0.05 * jax.random.normal(ks[7], (1, S), jnp.float32),
        'ln1_b': 0.05 * jax.random.normal(ks[8], (1, S), jnp.float32),
        'ln2_g': 1.0 + 0.05 * jax.random.normal(ks[9], (1, S), jnp.float32),
        'ln2_b': 0.05 * jax.random.normal(ks[10], (1, S), jnp.float32),
        'w1': 0.3 * jax.random.normal(ks[11], (S, H4), jnp.float32),
        'b1': 0.1 * jax.random.normal(ks[12], (1, H4), jnp.float32),
        'w2': 0.3 * jax.random.normal(ks[13], (H4, S), jnp.float32),
        'b2': 0.1 * jax.random.normal(ks[14], (1, S), jnp.float32),
    }

    x = jax.random.normal(ks[15], (B, T, C), jnp.float32)

    out = block_forward(x, params)
    out = jax.block_until_ready(out)

    ref = block_ref(x, params)
    assert out.shape == (B, T, C), out.shape
    np.testing.assert_allclose(np.asarray(out), np.asarray(ref), rtol=2e-3, atol=2e-3)

    print("KERNEL_OK")
</pallas_src>

<mosaic_0001>
module attributes {stable_mosaic.version = 11 : i64} {
  func.func @fused_block_kernel(%arg0: memref<16x100xf32, #tpu.memory_space<vmem>>, %arg1: memref<16x100xf32, #tpu.memory_space<vmem>>, %arg2: memref<10x30xf32, #tpu.memory_space<vmem>>, %arg3: memref<10x10xf32, #tpu.memory_space<vmem>>, %arg4: memref<10x40xf32, #tpu.memory_space<vmem>>, %arg5: memref<40x10xf32, #tpu.memory_space<vmem>>, %arg6: memref<10x80xf32, #tpu.memory_space<vmem>>, %arg7: memref<1x100xf32, #tpu.memory_space<vmem>>, %arg8: memref<2x800xf32, #tpu.memory_space<vmem>>, %arg9: memref<2x80xf32, #tpu.memory_space<vmem>>) attributes {dimension_semantics = [], scalar_prefetch = 0 : i64, scratch_operands = 1 : i64, tpu.core_type = #tpu.core_type<tc>} {
    %c0 = arith.constant 0 : index
    %c0_0 = arith.constant 0 : index
    %0 = vector.load %arg0[%c0, %c0_0] : memref<16x100xf32, #tpu.memory_space<vmem>>, vector<16x100xf32>
    %c0_1 = arith.constant 0 : index
    %c0_2 = arith.constant 0 : index
    %1 = vector.load %arg1[%c0_1, %c0_2] : memref<16x100xf32, #tpu.memory_space<vmem>>, vector<16x100xf32>
    %2 = arith.mulf %0, %1 : vector<16x100xf32>
    %3 = vector.extract_strided_slice %2 {offsets = [0, 0], sizes = [16, 10], strides = [1, 1]} : vector<16x100xf32> to vector<16x10xf32>
    %4 = vector.extract_strided_slice %2 {offsets = [0, 10], sizes = [16, 10], strides = [1, 1]} : vector<16x100xf32> to vector<16x10xf32>
    %5 = arith.addf %3, %4 : vector<16x10xf32>
    %6 = vector.extract_strided_slice %2 {offsets = [0, 20], sizes = [16, 10], strides = [1, 1]} : vector<16x100xf32> to vector<16x10xf32>
    %7 = arith.addf %5, %6 : vector<16x10xf32>
    %8 = vector.extract_strided_slice %2 {offsets = [0, 30], sizes = [16, 10], strides = [1, 1]} : vector<16x100xf32> to vector<16x10xf32>
    %9 = arith.addf %7, %8 : vector<16x10xf32>
    %10 = vector.extract_strided_slice %2 {offsets = [0, 40], sizes = [16, 10], strides = [1, 1]} : vector<16x100xf32> to vector<16x10xf32>
    %11 = arith.addf %9, %10 : vector<16x10xf32>
    %12 = vector.extract_strided_slice %2 {offsets = [0, 50], sizes = [16, 10], strides = [1, 1]} : vector<16x100xf32> to vector<16x10xf32>
    %13 = arith.addf %11, %12 : vector<16x10xf32>
    %14 = vector.extract_strided_slice %2 {offsets = [0, 60], sizes = [16, 10], strides = [1, 1]} : vector<16x100xf32> to vector<16x10xf32>
    %15 = arith.addf %13, %14 : vector<16x10xf32>
    %16 = vector.extract_strided_slice %2 {offsets = [0, 70], sizes = [16, 10], strides = [1, 1]} : vector<16x100xf32> to vector<16x10xf32>
    %17 = arith.addf %15, %16 : vector<16x10xf32>
    %18 = vector.extract_strided_slice %2 {offsets = [0, 80], sizes = [16, 10], strides = [1, 1]} : vector<16x100xf32> to vector<16x10xf32>
    %19 = arith.addf %17, %18 : vector<16x10xf32>
    %20 = vector.extract_strided_slice %2 {offsets = [0, 90], sizes = [16, 10], strides = [1, 1]} : vector<16x100xf32> to vector<16x10xf32>
    %21 = arith.addf %19, %20 : vector<16x10xf32>
    %c0_3 = arith.constant 0 : index
    %c0_4 = arith.constant 0 : index
    %22 = vector.load %arg7[%c0_3, %c0_4] : memref<1x100xf32, #tpu.memory_space<vmem>>, vector<1x100xf32>
    %23 = vector.extract_strided_slice %22 {offsets = [0, 0], sizes = [1, 10], strides = [1, 1]} : vector<1x100xf32> to vector<1x10xf32>
    %24 = vector.extract_strided_slice %22 {offsets = [0, 10], sizes = [1, 10], strides = [1, 1]} : vector<1x100xf32> to vector<1x10xf32>
    %25 = vector.extract_strided_slice %22 {offsets = [0, 20], sizes = [1, 10], strides = [1, 1]} : vector<1x100xf32> to vector<1x10xf32>
    %26 = vector.extract_strided_slice %22 {offsets = [0, 30], sizes = [1, 10], strides = [1, 1]} : vector<1x100xf32> to vector<1x10xf32>
    %27 = vector.extract_strided_slice %22 {offsets = [0, 40], sizes = [1, 10], strides = [1, 1]} : vector<1x100xf32> to vector<1x10xf32>
    %28 = vector.extract_strided_slice %22 {offsets = [0, 50], sizes = [1, 10], strides = [1, 1]} : vector<1x100xf32> to vector<1x10xf32>
    %29 = vector.extract_strided_slice %22 {offsets = [0, 60], sizes = [1, 40], strides = [1, 1]} : vector<1x100xf32> to vector<1x40xf32>
    %cst = arith.constant dense<0.000000e+00> : vector<16xf32>
    %30 = vector.multi_reduction <add>, %21, %cst [1] : vector<16x10xf32> to vector<16xf32>
    %31 = vector.shape_cast %30 : vector<16xf32> to vector<16x1xf32>
    %cst_5 = arith.constant 1.000000e+01 : f32
    %32 = vector.broadcast %cst_5 : f32 to vector<16x1xf32>
    %33 = arith.divf %31, %32 : vector<16x1xf32>
    %34 = vector.broadcast %33 : vector<16x1xf32> to vector<16x10xf32>
    %35 = arith.subf %21, %34 : vector<16x10xf32>
    %36 = arith.mulf %35, %35 : vector<16x10xf32>
    %cst_6 = arith.constant dense<0.000000e+00> : vector<16xf32>
    %37 = vector.multi_reduction <add>, %36, %cst_6 [1] : vector<16x10xf32> to vector<16xf32>
    %38 = vector.shape_cast %37 : vector<16xf32> to vector<16x1xf32>
    %cst_7 = arith.constant 1.000000e+01 : f32
    %39 = vector.broadcast %cst_7 : f32 to vector<16x1xf32>
    %40 = arith.divf %38, %39 : vector<16x1xf32>
    %41 = vector.broadcast %33 : vector<16x1xf32> to vector<16x10xf32>
    %42 = arith.subf %21, %41 : vector<16x10xf32>
    %cst_8 = arith.constant 9.99999974E-6 : f32
    %43 = vector.broadcast %cst_8 : f32 to vector<16x1xf32>
    %44 = arith.addf %40, %43 : vector<16x1xf32>
    %45 = math.rsqrt %44 : vector<16x1xf32>
    %46 = vector.broadcast %45 : vector<16x1xf32> to vector<16x10xf32>
    %47 = arith.mulf %42, %46 : vector<16x10xf32>
    %48 = vector.broadcast %23 : vector<1x10xf32> to vector<16x10xf32>
    %49 = arith.mulf %47, %48 : vector<16x10xf32>
    %50 = vector.broadcast %24 : vector<1x10xf32> to vector<16x10xf32>
    %51 = arith.addf %49, %50 : vector<16x10xf32>
    %c0_9 = arith.constant 0 : index
    %c0_10 = arith.constant 0 : index
    %52 = vector.load %arg2[%c0_9, %c0_10] : memref<10x30xf32, #tpu.memory_space<vmem>>, vector<10x30xf32>
    %cst_11 = arith.constant dense<0.000000e+00> : vector<16x30xf32>
    %53 = tpu.matmul %51, %52, %cst_11 {dimension_numbers = #tpu.dot_dimension_numbers<[1], [0], [0], [1], [0, 0, 1, 1], [], []>} : vector<16x10xf32>, vector<10x30xf32>, vector<16x30xf32> -> vector<16x30xf32>
    %54 = vector.extract_strided_slice %53 {offsets = [0, 0], sizes = [16, 10], strides = [1, 1]} : vector<16x30xf32> to vector<16x10xf32>
    %55 = vector.extract_strided_slice %53 {offsets = [0, 10], sizes = [16, 10], strides = [1, 1]} : vector<16x30xf32> to vector<16x10xf32>
    %56 = vector.extract_strided_slice %53 {offsets = [0, 20], sizes = [16, 10], strides = [1, 1]} : vector<16x30xf32> to vector<16x10xf32>
    %57 = vector.extract_strided_slice %55 {offsets = [0, 0], sizes = [8, 10], strides = [1, 1]} : vector<16x10xf32> to vector<8x10xf32>
    %cst_12 = arith.constant dense<0.000000e+00> : vector<10xf32>
    %58 = vector.multi_reduction <add>, %57, %cst_12 [0] : vector<8x10xf32> to vector<10xf32>
    %59 = vector.shape_cast %58 : vector<10xf32> to vector<1x10xf32>
    %60 = vector.shape_cast %59 : vector<1x10xf32> to vector<1x10xf32>
    %61 = vector.broadcast %60 : vector<1x10xf32> to vector<8x10xf32>
    %62 = vector.extract_strided_slice %55 {offsets = [8, 0], sizes = [8, 10], strides = [1, 1]} : vector<16x10xf32> to vector<8x10xf32>
    %cst_13 = arith.constant dense<0.000000e+00> : vector<10xf32>
    %63 = vector.multi_reduction <add>, %62, %cst_13 [0] : vector<8x10xf32> to vector<10xf32>
    %64 = vector.shape_cast %63 : vector<10xf32> to vector<1x10xf32>
    %65 = vector.shape_cast %64 : vector<1x10xf32> to vector<1x10xf32>
    %66 = vector.broadcast %65 : vector<1x10xf32> to vector<8x10xf32>
    %67 = tpu.concatenate %61, %66 in 0 : vector<8x10xf32>, vector<8x10xf32> -> vector<16x10xf32>
    %68 = arith.mulf %54, %67 : vector<16x10xf32>
    %69 = vector.extract_strided_slice %68 {offsets = [0, 0], sizes = [8, 10], strides = [1, 1]} : vector<16x10xf32> to vector<8x10xf32>
    %cst_14 = arith.constant dense<0xFF800000> : vector<10xf32>
    %70 = vector.multi_reduction <maximumf>, %69, %cst_14 [0] : vector<8x10xf32> to vector<10xf32>
    %71 = vector.shape_cast %70 : vector<10xf32> to vector<1x10xf32>
    %72 = vector.shape_cast %71 : vector<1x10xf32> to vector<1x10xf32>
    %73 = vector.broadcast %72 : vector<1x10xf32> to vector<8x10xf32>
    %74 = vector.extract_strided_slice %68 {offsets = [8, 0], sizes = [8, 10], strides = [1, 1]} : vector<16x10xf32> to vector<8x10xf32>
    %cst_15 = arith.constant dense<0xFF800000> : vector<10xf32>
    %75 = vector.multi_reduction <maximumf>, %74, %cst_15 [0] : vector<8x10xf32> to vector<10xf32>
    %76 = vector.shape_cast %75 : vector<10xf32> to vector<1x10xf32>
    %77 = vector.shape_cast %76 : vector<1x10xf32> to vector<1x10xf32>
    %78 = vector.broadcast %77 : vector<1x10xf32> to vector<8x10xf32>
    %79 = tpu.concatenate %73, %78 in 0 : vector<8x10xf32>, vector<8x10xf32> -> vector<16x10xf32>
    %80 = arith.subf %68, %79 : vector<16x10xf32>
    %81 = math.exp %80 : vector<16x10xf32>
    %82 = vector.extract_strided_slice %81 {offsets = [0, 0], sizes = [8, 10], strides = [1, 1]} : vector<16x10xf32> to vector<8x10xf32>
    %cst_16 = arith.constant dense<0.000000e+00> : vector<10xf32>
    %83 = vector.multi_reduction <add>, %82, %cst_16 [0] : vector<8x10xf32> to vector<10xf32>
    %84 = vector.shape_cast %83 : vector<10xf32> to vector<1x10xf32>
    %85 = vector.shape_cast %84 : vector<1x10xf32> to vector<1x10xf32>
    %86 = vector.broadcast %85 : vector<1x10xf32> to vector<8x10xf32>
    %87 = vector.extract_strided_slice %81 {offsets = [8, 0], sizes = [8, 10], strides = [1, 1]} : vector<16x10xf32> to vector<8x10xf32>
    %cst_17 = arith.constant dense<0.000000e+00> : vector<10xf32>
    %88 = vector.multi_reduction <add>, %87, %cst_17 [0] : vector<8x10xf32> to vector<10xf32>
    %89 = vector.shape_cast %88 : vector<10xf32> to vector<1x10xf32>
    %90 = vector.shape_cast %89 : vector<1x10xf32> to vector<1x10xf32>
    %91 = vector.broadcast %90 : vector<1x10xf32> to vector<8x10xf32>
    %92 = tpu.concatenate %86, %91 in 0 : vector<8x10xf32>, vector<8x10xf32> -> vector<16x10xf32>
    %93 = arith.divf %81, %92 : vector<16x10xf32>
    %94 = vector.extract_strided_slice %56 {offsets = [0, 0], sizes = [8, 10], strides = [1, 1]} : vector<16x10xf32> to vector<8x10xf32>
    %cst_18 = arith.constant dense<0.000000e+00> : vector<10xf32>
    %95 = vector.multi_reduction <add>, %94, %cst_18 [0] : vector<8x10xf32> to vector<10xf32>
    %96 = vector.shape_cast %95 : vector<10xf32> to vector<1x10xf32>
    %97 = vector.shape_cast %96 : vector<1x10xf32> to vector<1x10xf32>
    %98 = vector.broadcast %97 : vector<1x10xf32> to vector<8x10xf32>
    %99 = vector.extract_strided_slice %56 {offsets = [8, 0], sizes = [8, 10], strides = [1, 1]} : vector<16x10xf32> to vector<8x10xf32>
    %cst_19 = arith.constant dense<0.000000e+00> : vector<10xf32>
    %100 = vector.multi_reduction <add>, %99, %cst_19 [0] : vector<8x10xf32> to vector<10xf32>
    %101 = vector.shape_cast %100 : vector<10xf32> to vector<1x10xf32>
    %102 = vector.shape_cast %101 : vector<1x10xf32> to vector<1x10xf32>
    %103 = vector.broadcast %102 : vector<1x10xf32> to vector<8x10xf32>
    %104 = tpu.concatenate %98, %103 in 0 : vector<8x10xf32>, vector<8x10xf32> -> vector<16x10xf32>
    %105 = arith.mulf %104, %93 : vector<16x10xf32>
    %c0_20 = arith.constant 0 : index
    %c0_21 = arith.constant 0 : index
    %106 = vector.load %arg3[%c0_20, %c0_21] : memref<10x10xf32, #tpu.memory_space<vmem>>, vector<10x10xf32>
    %cst_22 = arith.constant dense<0.000000e+00> : vector<16x10xf32>
    %107 = tpu.matmul %105, %106, %cst_22 {dimension_numbers = #tpu.dot_dimension_numbers<[1], [0], [0], [1], [0, 0, 1, 1], [], []>} : vector<16x10xf32>, vector<10x10xf32>, vector<16x10xf32> -> vector<16x10xf32>
    %108 = vector.broadcast %27 : vector<1x10xf32> to vector<16x10xf32>
    %109 = arith.addf %107, %108 : vector<16x10xf32>
    %110 = arith.addf %21, %109 : vector<16x10xf32>
    %cst_23 = arith.constant dense<0.000000e+00> : vector<16xf32>
    %111 = vector.multi_reduction <add>, %110, %cst_23 [1] : vector<16x10xf32> to vector<16xf32>
    %112 = vector.shape_cast %111 : vector<16xf32> to vector<16x1xf32>
    %cst_24 = arith.constant 1.000000e+01 : f32
    %113 = vector.broadcast %cst_24 : f32 to vector<16x1xf32>
    %114 = arith.divf %112, %113 : vector<16x1xf32>
    %115 = vector.broadcast %114 : vector<16x1xf32> to vector<16x10xf32>
    %116 = arith.subf %110, %115 : vector<16x10xf32>
    %117 = arith.mulf %116, %116 : vector<16x10xf32>
    %cst_25 = arith.constant dense<0.000000e+00> : vector<16xf32>
    %118 = vector.multi_reduction <add>, %117, %cst_25 [1] : vector<16x10xf32> to vector<16xf32>
    %119 = vector.shape_cast %118 : vector<16xf32> to vector<16x1xf32>
    %cst_26 = arith.constant 1.000000e+01 : f32
    %120 = vector.broadcast %cst_26 : f32 to vector<16x1xf32>
    %121 = arith.divf %119, %120 : vector<16x1xf32>
    %122 = vector.broadcast %114 : vector<16x1xf32> to vector<16x10xf32>
    %123 = arith.subf %110, %122 : vector<16x10xf32>
    %cst_27 = arith.constant 9.99999974E-6 : f32
    %124 = vector.broadcast %cst_27 : f32 to vector<16x1xf32>
    %125 = arith.addf %121, %124 : vector<16x1xf32>
    %126 = math.rsqrt %125 : vector<16x1xf32>
    %127 = vector.broadcast %126 : vector<16x1xf32> to vector<16x10xf32>
    %128 = arith.mulf %123, %127 : vector<16x10xf32>
    %129 = vector.broadcast %25 : vector<1x10xf32> to vector<16x10xf32>
    %130 = arith.mulf %128, %129 : vector<16x10xf32>
    %131 = vector.broadcast %26 : vector<1x10xf32> to vector<16x10xf32>
    %132 = arith.addf %130, %131 : vector<16x10xf32>
    %c0_28 = arith.constant 0 : index
    %c0_29 = arith.constant 0 : index
    %133 = vector.load %arg4[%c0_28, %c0_29] : memref<10x40xf32, #tpu.memory_space<vmem>>, vector<10x40xf32>
    %cst_30 = arith.constant dense<0.000000e+00> : vector<16x40xf32>
    %134 = tpu.matmul %132, %133, %cst_30 {dimension_numbers = #tpu.dot_dimension_numbers<[1], [0], [0], [1], [0, 0, 1, 1], [], []>} : vector<16x10xf32>, vector<10x40xf32>, vector<16x40xf32> -> vector<16x40xf32>
    %135 = vector.broadcast %29 : vector<1x40xf32> to vector<16x40xf32>
    %136 = arith.addf %134, %135 : vector<16x40xf32>
    %cst_31 = arith.constant 0.000000e+00 : f32
    %137 = vector.broadcast %cst_31 : f32 to vector<16x40xf32>
    %138 = arith.maximumf %136, %137 : vector<16x40xf32>
    %c0_32 = arith.constant 0 : index
    %c0_33 = arith.constant 0 : index
    %139 = vector.load %arg5[%c0_32, %c0_33] : memref<40x10xf32, #tpu.memory_space<vmem>>, vector<40x10xf32>
    %cst_34 = arith.constant dense<0.000000e+00> : vector<16x10xf32>
    %140 = tpu.matmul %138, %139, %cst_34 {dimension_numbers = #tpu.dot_dimension_numbers<[1], [0], [0], [1], [0, 0, 1, 1], [], []>} : vector<16x40xf32>, vector<40x10xf32>, vector<16x10xf32> -> vector<16x10xf32>
    %141 = arith.addf %110, %140 : vector<16x10xf32>
    %142 = vector.broadcast %28 : vector<1x10xf32> to vector<16x10xf32>
    %143 = arith.addf %141, %142 : vector<16x10xf32>
    %144 = vector.extract_strided_slice %143 {offsets = [0, 0], sizes = [1, 10], strides = [1, 1]} : vector<16x10xf32> to vector<1x10xf32>
    %c0_35 = arith.constant 0 : index
    %c0_36 = arith.constant 0 : index
    %145 = vector.load %arg9[%c0_35, %c0_36] : memref<2x80xf32, #tpu.memory_space<vmem>>, vector<1x10xf32>
    tpu.vector_store %arg9[%c0_35, %c0_36], %144 {strides = array<i32>} : memref<2x80xf32, #tpu.memory_space<vmem>>, vector<1x10xf32>,
    %146 = vector.extract_strided_slice %143 {offsets = [1, 0], sizes = [1, 10], strides = [1, 1]} : vector<16x10xf32> to vector<1x10xf32>
    %c0_37 = arith.constant 0 : index
    %c10 = arith.constant 10 : index
    %147 = vector.load %arg9[%c0_37, %c10] : memref<2x80xf32, #tpu.memory_space<vmem>>, vector<1x10xf32>
    tpu.vector_store %arg9[%c0_37, %c10], %146 {strides = array<i32>} : memref<2x80xf32, #tpu.memory_space<vmem>>, vector<1x10xf32>,
    %148 = vector.extract_strided_slice %143 {offsets = [2, 0], sizes = [1, 10], strides = [1, 1]} : vector<16x10xf32> to vector<1x10xf32>
    %c0_38 = arith.constant 0 : index
    %c20 = arith.constant 20 : index
    %149 = vector.load %arg9[%c0_38, %c20] : memref<2x80xf32, #tpu.memory_space<vmem>>, vector<1x10xf32>
    tpu.vector_store %arg9[%c0_38, %c20], %148 {strides = array<i32>} : memref<2x80xf32, #tpu.memory_space<vmem>>, vector<1x10xf32>,
    %150 = vector.extract_strided_slice %143 {offsets = [3, 0], sizes = [1, 10], strides = [1, 1]} : vector<16x10xf32> to vector<1x10xf32>
    %c0_39 = arith.constant 0 : index
    %c30 = arith.constant 30 : index
    %151 = vector.load %arg9[%c0_39, %c30] : memref<2x80xf32, #tpu.memory_space<vmem>>, vector<1x10xf32>
    tpu.vector_store %arg9[%c0_39, %c30], %150 {strides = array<i32>} : memref<2x80xf32, #tpu.memory_space<vmem>>, vector<1x10xf32>,
    %152 = vector.extract_strided_slice %143 {offsets = [4, 0], sizes = [1, 10], strides = [1, 1]} : vector<16x10xf32> to vector<1x10xf32>
    %c0_40 = arith.constant 0 : index
    %c40 = arith.constant 40 : index
    %153 = vector.load %arg9[%c0_40, %c40] : memref<2x80xf32, #tpu.memory_space<vmem>>, vector<1x10xf32>
    tpu.vector_store %arg9[%c0_40, %c40], %152 {strides = array<i32>} : memref<2x80xf32, #tpu.memory_space<vmem>>, vector<1x10xf32>,
    %154 = vector.extract_strided_slice %143 {offsets = [5, 0], sizes = [1, 10], strides = [1, 1]} : vector<16x10xf32> to vector<1x10xf32>
    %c0_41 = arith.constant 0 : index
    %c50 = arith.constant 50 : index
    %155 = vector.load %arg9[%c0_41, %c50] : memref<2x80xf32, #tpu.memory_space<vmem>>, vector<1x10xf32>
    tpu.vector_store %arg9[%c0_41, %c50], %154 {strides = array<i32>} : memref<2x80xf32, #tpu.memory_space<vmem>>, vector<1x10xf32>,
    %156 = vector.extract_strided_slice %143 {offsets = [6, 0], sizes = [1, 10], strides = [1, 1]} : vector<16x10xf32> to vector<1x10xf32>
    %c0_42 = arith.constant 0 : index
    %c60 = arith.constant 60 : index
    %157 = vector.load %arg9[%c0_42, %c60] : memref<2x80xf32, #tpu.memory_space<vmem>>, vector<1x10xf32>
    tpu.vector_store %arg9[%c0_42, %c60], %156 {strides = array<i32>} : memref<2x80xf32, #tpu.memory_space<vmem>>, vector<1x10xf32>,
    %158 = vector.extract_strided_slice %143 {offsets = [7, 0], sizes = [1, 10], strides = [1, 1]} : vector<16x10xf32> to vector<1x10xf32>
    %c0_43 = arith.constant 0 : index
    %c70 = arith.constant 70 : index
    %159 = vector.load %arg9[%c0_43, %c70] : memref<2x80xf32, #tpu.memory_space<vmem>>, vector<1x10xf32>
    tpu.vector_store %arg9[%c0_43, %c70], %158 {strides = array<i32>} : memref<2x80xf32, #tpu.memory_space<vmem>>, vector<1x10xf32>,
    %160 = vector.extract_strided_slice %143 {offsets = [8, 0], sizes = [1, 10], strides = [1, 1]} : vector<16x10xf32> to vector<1x10xf32>
    %c1 = arith.constant 1 : index
    %c0_44 = arith.constant 0 : index
    %161 = vector.load %arg9[%c1, %c0_44] : memref<2x80xf32, #tpu.memory_space<vmem>>, vector<1x10xf32>
    tpu.vector_store %arg9[%c1, %c0_44], %160 {strides = array<i32>} : memref<2x80xf32, #tpu.memory_space<vmem>>, vector<1x10xf32>,
    %162 = vector.extract_strided_slice %143 {offsets = [9, 0], sizes = [1, 10], strides = [1, 1]} : vector<16x10xf32> to vector<1x10xf32>
    %c1_45 = arith.constant 1 : index
    %c10_46 = arith.constant 10 : index
    %163 = vector.load %arg9[%c1_45, %c10_46] : memref<2x80xf32, #tpu.memory_space<vmem>>, vector<1x10xf32>
    tpu.vector_store %arg9[%c1_45, %c10_46], %162 {strides = array<i32>} : memref<2x80xf32, #tpu.memory_space<vmem>>, vector<1x10xf32>,
    %164 = vector.extract_strided_slice %143 {offsets = [10, 0], sizes = [1, 10], strides = [1, 1]} : vector<16x10xf32> to vector<1x10xf32>
    %c1_47 = arith.constant 1 : index
    %c20_48 = arith.constant 20 : index
    %165 = vector.load %arg9[%c1_47, %c20_48] : memref<2x80xf32, #tpu.memory_space<vmem>>, vector<1x10xf32>
    tpu.vector_store %arg9[%c1_47, %c20_48], %164 {strides = array<i32>} : memref<2x80xf32, #tpu.memory_space<vmem>>, vector<1x10xf32>,
    %166 = vector.extract_strided_slice %143 {offsets = [11, 0], sizes = [1, 10], strides = [1, 1]} : vector<16x10xf32> to vector<1x10xf32>
    %c1_49 = arith.constant 1 : index
    %c30_50 = arith.constant 30 : index
    %167 = vector.load %arg9[%c1_49, %c30_50] : memref<2x80xf32, #tpu.memory_space<vmem>>, vector<1x10xf32>
    tpu.vector_store %arg9[%c1_49, %c30_50], %166 {strides = array<i32>} : memref<2x80xf32, #tpu.memory_space<vmem>>, vector<1x10xf32>,
    %168 = vector.extract_strided_slice %143 {offsets = [12, 0], sizes = [1, 10], strides = [1, 1]} : vector<16x10xf32> to vector<1x10xf32>
    %c1_51 = arith.constant 1 : index
    %c40_52 = arith.constant 40 : index
    %169 = vector.load %arg9[%c1_51, %c40_52] : memref<2x80xf32, #tpu.memory_space<vmem>>, vector<1x10xf32>
    tpu.vector_store %arg9[%c1_51, %c40_52], %168 {strides = array<i32>} : memref<2x80xf32, #tpu.memory_space<vmem>>, vector<1x10xf32>,
    %170 = vector.extract_strided_slice %143 {offsets = [13, 0], sizes = [1, 10], strides = [1, 1]} : vector<16x10xf32> to vector<1x10xf32>
    %c1_53 = arith.constant 1 : index
    %c50_54 = arith.constant 50 : index
    %171 = vector.load %arg9[%c1_53, %c50_54] : memref<2x80xf32, #tpu.memory_space<vmem>>, vector<1x10xf32>
    tpu.vector_store %arg9[%c1_53, %c50_54], %170 {strides = array<i32>} : memref<2x80xf32, #tpu.memory_space<vmem>>, vector<1x10xf32>,
    %172 = vector.extract_strided_slice %143 {offsets = [14, 0], sizes = [1, 10], strides = [1, 1]} : vector<16x10xf32> to vector<1x10xf32>
    %c1_55 = arith.constant 1 : index
    %c60_56 = arith.constant 60 : index
    %173 = vector.load %arg9[%c1_55, %c60_56] : memref<2x80xf32, #tpu.memory_space<vmem>>, vector<1x10xf32>
    tpu.vector_store %arg9[%c1_55, %c60_56], %172 {strides = array<i32>} : memref<2x80xf32, #tpu.memory_space<vmem>>, vector<1x10xf32>,
    %174 = vector.extract_strided_slice %143 {offsets = [15, 0], sizes = [1, 10], strides = [1, 1]} : vector<16x10xf32> to vector<1x10xf32>
    %c1_57 = arith.constant 1 : index
    %c70_58 = arith.constant 70 : index
    %175 = vector.load %arg9[%c1_57, %c70_58] : memref<2x80xf32, #tpu.memory_space<vmem>>, vector<1x10xf32>
    tpu.vector_store %arg9[%c1_57, %c70_58], %174 {strides = array<i32>} : memref<2x80xf32, #tpu.memory_space<vmem>>, vector<1x10xf32>,
    %c0_59 = arith.constant 0 : index
    %c0_60 = arith.constant 0 : index
    %176 = vector.load %arg9[%c0_59, %c0_60] : memref<2x80xf32, #tpu.memory_space<vmem>>, vector<2x80xf32>
    %c0_61 = arith.constant 0 : index
    %c0_62 = arith.constant 0 : index
    %177 = vector.load %arg6[%c0_61, %c0_62] : memref<10x80xf32, #tpu.memory_space<vmem>>, vector<10x80xf32>
    %178 = vector.extract_strided_slice %177 {offsets = [0, 0], sizes = [1, 80], strides = [1, 1]} : vector<10x80xf32> to vector<1x80xf32>
    %179 = vector.broadcast %178 : vector<1x80xf32> to vector<2x80xf32>
    %180 = arith.mulf %176, %179 : vector<2x80xf32>
    %c0_63 = arith.constant 0 : index
    %c0_64 = arith.constant 0 : index
    %181 = vector.load %arg8[%c0_63, %c0_64] : memref<2x800xf32, #tpu.memory_space<vmem>>, vector<2x80xf32>
    tpu.vector_store %arg8[%c0_63, %c0_64], %180 {strides = array<i32>} : memref<2x800xf32, #tpu.memory_space<vmem>>, vector<2x80xf32>,
    %182 = vector.extract_strided_slice %177 {offsets = [1, 0], sizes = [1, 80], strides = [1, 1]} : vector<10x80xf32> to vector<1x80xf32>
    %183 = vector.broadcast %182 : vector<1x80xf32> to vector<2x80xf32>
    %184 = arith.mulf %176, %183 : vector<2x80xf32>
    %c0_65 = arith.constant 0 : index
    %c80 = arith.constant 80 : index
    %185 = vector.load %arg8[%c0_65, %c80] : memref<2x800xf32, #tpu.memory_space<vmem>>, vector<2x80xf32>
    tpu.vector_store %arg8[%c0_65, %c80], %184 {strides = array<i32>} : memref<2x800xf32, #tpu.memory_space<vmem>>, vector<2x80xf32>,
    %186 = vector.extract_strided_slice %177 {offsets = [2, 0], sizes = [1, 80], strides = [1, 1]} : vector<10x80xf32> to vector<1x80xf32>
    %187 = vector.broadcast %186 : vector<1x80xf32> to vector<2x80xf32>
    %188 = arith.mulf %176, %187 : vector<2x80xf32>
    %c0_66 = arith.constant 0 : index
    %c160 = arith.constant 160 : index
    %189 = vector.load %arg8[%c0_66, %c160] : memref<2x800xf32, #tpu.memory_space<vmem>>, vector<2x80xf32>
    tpu.vector_store %arg8[%c0_66, %c160], %188 {strides = array<i32>} : memref<2x800xf32, #tpu.memory_space<vmem>>, vector<2x80xf32>,
    %190 = vector.extract_strided_slice %177 {offsets = [3, 0], sizes = [1, 80], strides = [1, 1]} : vector<10x80xf32> to vector<1x80xf32>
    %191 = vector.broadcast %190 : vector<1x80xf32> to vector<2x80xf32>
    %192 = arith.mulf %176, %191 : vector<2x80xf32>
    %c0_67 = arith.constant 0 : index
    %c240 = arith.constant 240 : index
    %193 = vector.load %arg8[%c0_67, %c240] : memref<2x800xf32, #tpu.memory_space<vmem>>, vector<2x80xf32>
    tpu.vector_store %arg8[%c0_67, %c240], %192 {strides = array<i32>} : memref<2x800xf32, #tpu.memory_space<vmem>>, vector<2x80xf32>,
    %194 = vector.extract_strided_slice %177 {offsets = [4, 0], sizes = [1, 80], strides = [1, 1]} : vector<10x80xf32> to vector<1x80xf32>
    %195 = vector.broadcast %194 : vector<1x80xf32> to vector<2x80xf32>
    %196 = arith.mulf %176, %195 : vector<2x80xf32>
    %c0_68 = arith.constant 0 : index
    %c320 = arith.constant 320 : index
    %197 = vector.load %arg8[%c0_68, %c320] : memref<2x800xf32, #tpu.memory_space<vmem>>, vector<2x80xf32>
    tpu.vector_store %arg8[%c0_68, %c320], %196 {strides = array<i32>} : memref<2x800xf32, #tpu.memory_space<vmem>>, vector<2x80xf32>,
    %198 = vector.extract_strided_slice %177 {offsets = [5, 0], sizes = [1, 80], strides = [1, 1]} : vector<10x80xf32> to vector<1x80xf32>
    %199 = vector.broadcast %198 : vector<1x80xf32> to vector<2x80xf32>
    %200 = arith.mulf %176, %199 : vector<2x80xf32>
    %c0_69 = arith.constant 0 : index
    %c400 = arith.constant 400 : index
    %201 = vector.load %arg8[%c0_69, %c400] : memref<2x800xf32, #tpu.memory_space<vmem>>, vector<2x80xf32>
    tpu.vector_store %arg8[%c0_69, %c400], %200 {strides = array<i32>} : memref<2x800xf32, #tpu.memory_space<vmem>>, vector<2x80xf32>,
    %202 = vector.extract_strided_slice %177 {offsets = [6, 0], sizes = [1, 80], strides = [1, 1]} : vector<10x80xf32> to vector<1x80xf32>
    %203 = vector.broadcast %202 : vector<1x80xf32> to vector<2x80xf32>
    %204 = arith.mulf %176, %203 : vector<2x80xf32>
    %c0_70 = arith.constant 0 : index
    %c480 = arith.constant 480 : index
    %205 = vector.load %arg8[%c0_70, %c480] : memref<2x800xf32, #tpu.memory_space<vmem>>, vector<2x80xf32>
    tpu.vector_store %arg8[%c0_70, %c480], %204 {strides = array<i32>} : memref<2x800xf32, #tpu.memory_space<vmem>>, vector<2x80xf32>,
    %206 = vector.extract_strided_slice %177 {offsets = [7, 0], sizes = [1, 80], strides = [1, 1]} : vector<10x80xf32> to vector<1x80xf32>
    %207 = vector.broadcast %206 : vector<1x80xf32> to vector<2x80xf32>
    %208 = arith.mulf %176, %207 : vector<2x80xf32>
    %c0_71 = arith.constant 0 : index
    %c560 = arith.constant 560 : index
    %209 = vector.load %arg8[%c0_71, %c560] : memref<2x800xf32, #tpu.memory_space<vmem>>, vector<2x80xf32>
    tpu.vector_store %arg8[%c0_71, %c560], %208 {strides = array<i32>} : memref<2x800xf32, #tpu.memory_space<vmem>>, vector<2x80xf32>,
    %210 = vector.extract_strided_slice %177 {offsets = [8, 0], sizes = [1, 80], strides = [1, 1]} : vector<10x80xf32> to vector<1x80xf32>
    %211 = vector.broadcast %210 : vector<1x80xf32> to vector<2x80xf32>
    %212 = arith.mulf %176, %211 : vector<2x80xf32>
    %c0_72 = arith.constant 0 : index
    %c640 = arith.constant 640 : index
    %213 = vector.load %arg8[%c0_72, %c640] : memref<2x800xf32, #tpu.memory_space<vmem>>, vector<2x80xf32>
    tpu.vector_store %arg8[%c0_72, %c640], %212 {strides = array<i32>} : memref<2x800xf32, #tpu.memory_space<vmem>>, vector<2x80xf32>,
    %214 = vector.extract_strided_slice %177 {offsets = [9, 0], sizes = [1, 80], strides = [1, 1]} : vector<10x80xf32> to vector<1x80xf32>
    %215 = vector.broadcast %214 : vector<1x80xf32> to vector<2x80xf32>
    %216 = arith.mulf %176, %215 : vector<2x80xf32>
    %c0_73 = arith.constant 0 : index
    %c720 = arith.constant 720 : index
    %217 = vector.load %arg8[%c0_73, %c720] : memref<2x800xf32, #tpu.memory_space<vmem>>, vector<2x80xf32>
    tpu.vector_store %arg8[%c0_73, %c720], %216 {strides = array<i32>} : memref<2x800xf32, #tpu.memory_space<vmem>>, vector<2x80xf32>,
    return
  }
}

</mosaic_0001>

<bundles_post_ra>
// kernel: block_forward.1
= control target key start
LH: loop header
LB: loop body
LE: loop exit
PB: predicated region body
PF: predicated region fallthrough
CT: control target
= control target key end

     0   :  { %s1026_s13 = smov 108   ;;  %s1027_s14 = smov 118   ;;  %vm110_vm0 = vcmask 80896   ;;  %vm159_vm1 = vcmask 1041408   ;;  %vm1035_vm2 = vmmov 1   ;;  %vm238_vm4 = vcmask 162896   ;;  %s1294_s0 = inlined_call_operand.vmem [shape: f32[16,100], index: 0, kind: input, shape index: {}]   ;;  %s1295_s1 = inlined_call_operand.vmem [shape: f32[16,100], index: 1, kind: input, shape index: {}]   ;;  %s1296_s7 = inlined_call_operand.vmem [shape: f32[1,100], index: 7, kind: input, shape index: {}]   ;;  %s1297_s2 = inlined_call_operand.vmem [shape: f32[10,30], index: 2, kind: input, shape index: {}]   ;;  %s1298_s3 = inlined_call_operand.vmem [shape: f32[10,10], index: 3, kind: input, shape index: {}]   ;;  %s1299_s4 = inlined_call_operand.vmem [shape: f32[10,40], index: 4, kind: input, shape index: {}]   ;;  %s1300_s5 = inlined_call_operand.vmem [shape: f32[40,10], index: 5, kind: input, shape index: {}]   ;;  %s1301_s6 = inlined_call_operand.vmem [shape: f32[10,80], index: 6, kind: input, shape index: {}]   ;;  %s1302_s8 = inlined_call_operand.vmem [shape: f32[2,800], index: 8, kind: output, shape index: {}]  }
   0x1   :  { %v29_v0 = vld [vmem:[%s1294_s0] sm:$0xff]  ;;  %v30_v2 = vld [vmem:[%s1294_s0 + $0x8] sm:$0xff]  ;;  %s1028_s15 = smov 98   ;;  %s1029_s0 = smov 88   ;;  %vm1146_vm3 = vmpackc.low %vm159_vm1, %vm1035_vm2  ;;  %vm301_vm5 = vcmask 244896   ;;  %vm553_vm6 = vcmask 326656  }
   0x2   :  { %v31_v1 = vld [vmem:[%s1295_s1] sm:$0xff]  ;;  %v32_v4 = vld [vmem:[%s1295_s1 + $0x8] sm:$0xff]  ;;  %s1030_s1 = smov 78   ;;  %s1031_s16 = smov 68   ;;  %vm642_vm7 = vcmask 73728   ;;  %vm648_vm8 = vcmask 156753  }
   0x3   :  { %v33_v3 = vmul.f32 %v31_v1, %v29_v0  ;;  %v34_v5 = vmul.f32 %v32_v4, %v30_v2  ;;  %s1032_s17 = smov 58   ;;  %s1033_s18 = smov 48   ;;  %v1132_v44 = vld [vmem:[%s1296_s7] ss:$0 sm:$0xff]  ;;  %v152_v56 = vld [vmem:[%s1297_s2 + $0x8] sm:$0x3] }
   0x4   :  { %s1034_s19 = smov 38   ;;  %v151_v55 = vld [vmem:[%s1297_s2] sm:$0xff]  ;;  %s1036_s28 = smov 20   ;;  %vm653_vm9 = vcmask 239778   ;;  %vm658_vm10 = vcmask 322803   ;;  %vm663_vm11 = vcmask 405828  }
   0x5   :  { %45 = vrot.lane.b32.xlu1 %v33_v3, %s1026_s13  ;;  %37 = vrot.lane.b32.xlu0 %v33_v3, %s1027_s14  ;;  %v960_v57 = vpack.c.bf16 %v152_v56, %v151_v55  ;;  %s1040_s20 = smov 50   ;;  %s1041_s21 = smov 60   ;;  %vm668_vm12 = vcmask 488853   ;;  %vm673_vm13 = vcmask 571878   ;;  %vm678_vm14 = vcmask 654903  }
   0x6   :  { %s1042_s7 = smov 70   ;;  %vm718_vm15 = vcmask 648192   ;;  %s1044_s26 = smov 112   ;;  %vm740_vm1 = vcmask 257026   ;;  %vm736_vm2 = vcmask 654336  }
   0x7   :  { %962 = vmatprep.subr.msk.bf16.mxu0 %vm1146_vm3, %v960_v57  ;;  %s1045_s27 = smov 80   ;;  %s1046_s29 = smov 32  }
   0x8   :  { %965 = vmatpush3.bf16.msk.msra.mxu0 %vm1146_vm3, %v960_v57  ;;  %s1047_s30 = smov 64   ;;  %s1048_s9 = smov 96  }
   0x9   :  { %47 = vrot.lane.b32.xlu1 %v34_v5, %s1026_s13  ;;  %39 = vrot.lane.b32.xlu0 %v34_v5, %s1027_s14  ;;  %s1049_s10 = smov 16  }
   0xd   :  { %55 = vrot.lane.b32.xlu1 %v34_v5, %s1028_s15  ;;  %53 = vrot.lane.b32.xlu0 %v33_v3, %s1028_s15 }
  0x11   :  { %63 = vrot.lane.b32.xlu1 %v34_v5, %s1029_s0  ;;  %61 = vrot.lane.b32.xlu0 %v33_v3, %s1029_s0 }
  0x15   :  { %71 = vrot.lane.b32.xlu1 %v34_v5, %s1030_s1  ;;  %69 = vrot.lane.b32.xlu0 %v33_v3, %s1030_s1 }
  0x19   :  { %79 = vrot.lane.b32.xlu1 %v34_v5, %s1031_s16  ;;  %77 = vrot.lane.b32.xlu0 %v33_v3, %s1031_s16 }
  0x1d   :  { %87 = vrot.lane.b32.xlu1 %v34_v5, %s1032_s17  ;;  %85 = vrot.lane.b32.xlu0 %v33_v3, %s1032_s17  ;;  %s1038_s17 = smov 30  }
  0x21   :  { %95 = vrot.lane.b32.xlu1 %v34_v5, %s1033_s18  ;;  %93 = vrot.lane.b32.xlu0 %v33_v3, %s1033_s18 }
  0x25   :  { %103 = vrot.lane.b32.xlu1 %v34_v5, %s1034_s19  ;;  %101 = vrot.lane.b32.xlu0 %v33_v3, %s1034_s19  ;;  %s1039_s19 = smov 40  }
  0x77   :  { %v46_v6 = vpop.permute.xlu1 %45  ;;  %v38_v7 = vpop.permute.xlu0 %37 }
  0x78   :  { %v43_v15 = vadd.f32 %v38_v7, %v33_v3 }
  0x7a   :  { %v51_v19 = vadd.f32 %v46_v6, %v43_v15 }
  0x7b   :  { %v48_v8 = vpop.permute.xlu1 %47  ;;  %v40_v9 = vpop.permute.xlu0 %39 }
  0x7c   :  { %v44_v14 = vadd.f32 %v40_v9, %v34_v5 }
  0x7e   :  { %v52_v18 = vadd.f32 %v48_v8, %v44_v14 }
  0x7f   :  { %v56_v10 = vpop.permute.xlu1 %55  ;;  %v54_v11 = vpop.permute.xlu0 %53 }
  0x80   :  { %v60_v22 = vadd.f32 %v56_v10, %v52_v18  ;;  %v59_v23 = vadd.f32 %v54_v11, %v51_v19 }
  0x83   :  { %v64_v12 = vpop.permute.xlu1 %63  ;;  %v62_v13 = vpop.permute.xlu0 %61 }
  0x84   :  { %v68_v24 = vadd.f32 %v64_v12, %v60_v22  ;;  %v67_v25 = vadd.f32 %v62_v13, %v59_v23 }
  0x87   :  { %v72_v16 = vpop.permute.xlu1 %71  ;;  %v70_v17 = vpop.permute.xlu0 %69 }
  0x88   :  { %v76_v28 = vadd.f32 %v72_v16, %v68_v24  ;;  %v75_v29 = vadd.f32 %v70_v17, %v67_v25 }
  0x8b   :  { %v80_v20 = vpop.permute.xlu1 %79  ;;  %v78_v21 = vpop.permute.xlu0 %77 }
  0x8c   :  { %v84_v30 = vadd.f32 %v80_v20, %v76_v28  ;;  %v83_v31 = vadd.f32 %v78_v21, %v75_v29 }
  0x8f   :  { %v88_v26 = vpop.permute.xlu1 %87  ;;  %v86_v27 = vpop.permute.xlu0 %85 }
  0x90   :  { %v92_v34 = vadd.f32 %v88_v26, %v84_v30  ;;  %v91_v35 = vadd.f32 %v86_v27, %v83_v31 }
  0x93   :  { %v96_v32 = vpop.permute.xlu1 %95  ;;  %v94_v33 = vpop.permute.xlu0 %93 }
  0x94   :  { %v100_v36 = vadd.f32 %v96_v32, %v92_v34  ;;  %v99_v37 = vadd.f32 %v94_v33, %v91_v35 }
  0x97   :  { %v104_v38 = vpop.permute.xlu1 %103  ;;  %v102_v39 = vpop.permute.xlu0 %101 }
  0x98   :  { %v1121_v40 = vadd.f32 %v104_v38, %v100_v36  ;;  %v1123_v41 = vadd.f32 %v102_v39, %v99_v37 }
  0x9a   :  { %v114_v42 = vsel %vm110_vm0, %v1121_v40, 0.0  ;;  %v111_v43 = vsel %vm110_vm0, %v1123_v41, 0.0 }
  0x9b   :  { %115 = vadd.xlane.f32.xlu1 %v114_v42  ;;  %112 = vadd.xlane.f32.xlu0 %v111_v43 }
  0xac   :  { %146 = vrot.lane.b32.xlu1 %v1132_v44, %s1027_s14 }
 0x128   :  { %v116_v45 = vpop.xlane.xlu1 %115  ;;  %v113_v46 = vpop.xlane.xlu0 %112 }
 0x129   :  { %v119_v47 = vmul.f32 0.1, %v116_v45  ;;  %v118_v48 = vmul.f32 0.1, %v113_v46 }
 0x12b   :  { %v121_v49 = vsub.f32 %v1121_v40, %v119_v47  ;;  %v120_v50 = vsub.f32 %v1123_v41, %v118_v48 }
 0x12c   :  { %v147_v3 = vpop.permute.xlu1 %146 }
 0x12d   :  { %v122_v51 = vmul.f32 %v120_v50, %v120_v50  ;;  %v123_v53 = vmul.f32 %v121_v49, %v121_v49 }
 0x12f   :  { %v124_v52 = vsel %vm110_vm0, %v122_v51, 0.0  ;;  %v127_v54 = vsel %vm110_vm0, %v123_v53, 0.0 }
 0x130   :  { %125 = vadd.xlane.f32.xlu0 %v124_v52 }
 0x134   :  { %128 = vadd.xlane.f32.xlu0 %v127_v54 }
 0x1bd   :  { %v126_v59 = vpop.xlane.xlu0 %125 }
 0x1be   :  { %v130_v60 = vmul.f32 0.1, %v126_v59 }
 0x1c0   :  { %v132_v61 = vadd.f32 1e-05, %v130_v60 }
 0x1c1   :  { %v129_v62 = vpop.xlane.xlu0 %128 }
 0x1c2   :  { %1010 = vrsqrt.f32 %v132_v61  ;;  %v131_v63 = vmul.f32 0.1, %v129_v62 }
 0x1c4   :  { %v133_v0 = vadd.f32 1e-05, %v131_v63 }
 0x1c6   :  { %1012 = vrsqrt.f32 %v133_v0 }
 0x1cc   :  { %v1011_v1 = vpop.eup %1010 }
 0x1cd   :  { %v136_v2 = vmul.f32 %v1011_v1, %v120_v50 }
 0x1cf   :  { %v144_v4 = vmul.f32 %v1132_v44, %v136_v2 }
 0x1d0   :  { %v1013_v5 = vpop.eup %1012 }
 0x1d1   :  { %v137_v6 = vmul.f32 %v1013_v5, %v121_v49  ;;  %v149_v7 = vadd.f32 %v147_v3, %v144_v4  ;;  %v326_v4 = vld [vmem:[%s1298_s3] sm:$0xff]  ;;  %v327_v5 = vld [vmem:[%s1298_s3 + $0x8] sm:$0x3] }
 0x1d3   :  { %v145_v8 = vmul.f32 %v1132_v44, %v137_v6  ;;  %930 = vmatprep.mubr.msk.f32.mxu0 %vm110_vm0, %v149_v7  ;;  %v966_v6 = vpack.c.bf16 %v327_v5, %v326_v4 }
 0x1d5   :  { %v150_v9 = vadd.f32 %v147_v3, %v145_v8  ;;  %968 = vmatprep.subr.msk.bf16.mxu0 %vm1146_vm3, %v966_v6 }
 0x1d7   :  { %931 = vmatmul.mubr.msk.f32.vlgmr.msra.gmra.mrb[0].mxu0 %vm110_vm0, %v150_v9 }
 0x1d8   :  { %971 = vmatpush3.bf16.msk.msra.mxu0 %vm1146_vm3, %v966_v6 }
 0x2aa   :  { %v1158_v10 = vpop.f32.mrb[0].mxu0 }
 0x2ab   :  { %v246_v11 = vsel %vm238_vm4, %v1158_v10, 0.0  ;;  %v1161_v12 = vpop.f32.mrb[1].mxu0 }
 0x2ac   :  { %v247_v13 = vrot.slane %v246_v11, 4  ;;  %v239_v14 = vsel %vm238_vm4, %v1161_v12, 0.0  ;;  %vm781_vm4 = vcmask 519170  }
 0x2ad   :  { %v240_v15 = vrot.slane %v239_v14, 4 }
 0x2ae   :  { %v248_v16 = vadd.f32 %v247_v13, %v246_v11  ;;  %v309_v13 = vsel %vm301_vm5, %v1158_v10, 0.0 }
 0x2af   :  { %v241_v17 = vadd.f32 %v240_v15, %v239_v14  ;;  %v302_v14 = vsel %vm301_vm5, %v1161_v12, 0.0  ;;  %v310_v15 = vrot.slane %v309_v13, 4 }
 0x2b0   :  { %v249_v18 = vrot.slane %v248_v16, 2 }
 0x2b1   :  { %v242_v19 = vrot.slane %v241_v17, 2 }
 0x2b2   :  { %v250_v20 = vadd.f32 %v249_v18, %v248_v16  ;;  %v303_v16 = vrot.slane %v302_v14, 4 }
 0x2b3   :  { %v243_v21 = vadd.f32 %v242_v19, %v241_v17  ;;  %v311_v17 = vadd.f32 %v310_v15, %v309_v13  ;;  %v552_v13 = vld [vmem:[%s1300_s5 + $0x20] sm:$0xff] }
 0x2b4   :  { %v251_v22 = vrot.slane %v250_v20, 1  ;;  %v304_v18 = vadd.f32 %v303_v16, %v302_v14 }
 0x2b5   :  { %v244_v23 = vrot.slane %v243_v21, 1  ;;  %v312_v19 = vrot.slane %v311_v17, 2 }
 0x2b6   :  { %v252_v24 = vadd.f32 %v251_v22, %v250_v20  ;;  %v305_v20 = vrot.slane %v304_v18, 2 }
 0x2b7   :  { %v245_v25 = vadd.f32 %v244_v23, %v243_v21  ;;  %v313_v21 = vadd.f32 %v312_v19, %v311_v17 }
 0x2b8   :  { %257 = vrot.lane.b32.xlu1 %v252_v24, %s1027_s14  ;;  %v306_v22 = vadd.f32 %v305_v20, %v304_v18 }
 0x2b9   :  { %255 = vrot.lane.b32.xlu0 %v245_v25, %s1027_s14  ;;  %v314_v23 = vrot.slane %v313_v21, 1 }
 0x2ba   :  { %v307_v24 = vrot.slane %v306_v22, 1 }
 0x2bb   :  { %v315_v25 = vadd.f32 %v314_v23, %v313_v21 }
 0x32a   :  { %v258_v26 = vpop.permute.xlu1 %257 }
 0x32b   :  { %v262_v27 = vmul.f32 %v1158_v10, %v258_v26  ;;  %v256_v28 = vpop.permute.xlu0 %255 }
 0x32c   :  { %v261_v29 = vmul.f32 %v256_v28, %v1161_v12 }
 0x32d   :  { %v270_v30 = vsel %vm110_vm0, %v262_v27, -inf }
 0x32e   :  { %v271_v31 = vrot.slane %v270_v30, 4  ;;  %v263_v32 = vsel %vm110_vm0, %v261_v29, -inf }
 0x32f   :  { %v264_v33 = vrot.slane %v263_v32, 4 }
 0x330   :  { %v272_v34 = vmax.f32 %v270_v30, %v271_v31 }
 0x331   :  { %v265_v35 = vmax.f32 %v263_v32, %v264_v33 }
 0x332   :  { %v273_v36 = vrot.slane %v272_v34, 2 }
 0x333   :  { %v266_v37 = vrot.slane %v265_v35, 2 }
 0x334   :  { %v274_v38 = vmax.f32 %v272_v34, %v273_v36 }
 0x335   :  { %v267_v39 = vmax.f32 %v265_v35, %v266_v37 }
 0x336   :  { %v275_v42 = vrot.slane %v274_v38, 1 }
 0x337   :  { %v268_v43 = vrot.slane %v267_v39, 1 }
 0x338   :  { %v276_v45 = vmax.f32 %v274_v38, %v275_v42 }
 0x339   :  { %v269_v46 = vmax.f32 %v267_v39, %v268_v43 }
 0x33a   :  { %v278_v47 = vsub.f32 %v262_v27, %v276_v45  ;;  %v308_v27 = vadd.f32 %v307_v24, %v306_v22 }
 0x33b   :  { %v277_v48 = vsub.f32 %v261_v29, %v269_v46 }
 0x33c   :  { %v281_v49 = vmul.f32 1.442695, %v278_v47 }
 0x33d   :  { %v279_v50 = vmul.f32 1.442695, %v277_v48 }
 0x33e   :  { %1014 = vpow2.f32 %v281_v49 }
 0x33f   :  { %1016 = vpow2.f32 %v279_v50 }
 0x348   :  { %v1015_v51 = vpop.eup %1014 }
 0x349   :  { %v1017_v52 = vpop.eup %1016  ;;  %v290_v53 = vsel %vm110_vm0, %v1015_v51, 0.0 }
 0x34a   :  { %v291_v54 = vrot.slane %v290_v53, 4  ;;  %v283_v55 = vsel %vm110_vm0, %v1017_v52, 0.0 }
 0x34b   :  { %v284_v56 = vrot.slane %v283_v55, 4 }
 0x34c   :  { %v292_v57 = vadd.f32 %v291_v54, %v290_v53  ;;  %v548_v54 = vld [vmem:[%s1300_s5] sm:$0xff] }
 0x34d   :  { %v285_v59 = vadd.f32 %v284_v56, %v283_v55 }
 0x34e   :  { %v293_v60 = vrot.slane %v292_v57, 2 }
 0x34f   :  { %v286_v61 = vrot.slane %v285_v59, 2 }
 0x350   :  { %v294_v62 = vadd.f32 %v293_v60, %v292_v57 }
 0x351   :  { %v287_v63 = vadd.f32 %v286_v61, %v285_v59 }
 0x352   :  { %v295_v0 = vrot.slane %v294_v62, 1 }
 0x353   :  { %v288_v1 = vrot.slane %v287_v63, 1 }
 0x354   :  { %v296_v2 = vadd.f32 %v295_v0, %v294_v62 }
 0x355   :  { %v289_v3 = vadd.f32 %v288_v1, %v287_v63 }
 0x356   :  { %1018 = vrcp.f32 %v296_v2 }
 0x357   :  { %1020 = vrcp.f32 %v289_v3 }
 0x360   :  { %v1019_v7 = vpop.eup %1018 }
 0x361   :  { %v1021_v8 = vpop.eup %1020  ;;  %v300_v9 = vmul.f32 %v1019_v7, %v1015_v51  ;;  %v457_v51 = vld [vmem:[%s1299_s4] sm:$0xff] }
 0x362   :  { %v298_v11 = vmul.f32 %v1021_v8, %v1017_v52  ;;  %v458_v52 = vld [vmem:[%s1299_s4 + $0x8] sm:$0x3]  ;;  %v550_v8 = vld [vmem:[%s1300_s5 + $0x10] sm:$0xff] }
 0x363   :  { %320 = vrot.lane.b32.xlu0 %v300_v9, %s1036_s28  ;;  %v972_v53 = vpack.c.bf16 %v458_v52, %v457_v51  ;;  %v551_v9 = vld [vmem:[%s1300_s5 + $0x18] sm:$0xff]  ;;  %v712_v52 = vld [vmem:[%s1301_s6 + $0x8] sm:$0x3] }
 0x364   :  { %318 = vrot.lane.b32.xlu1 %v298_v11, %s1036_s28  ;;  %v982_v11 = vpack.c.bf16 %v551_v9, %v550_v8 }
 0x365   :  { %974 = vmatprep.subr.msk.bf16.mxu0 %vm1146_vm3, %v972_v53 }
 0x3d5   :  { %v321_v26 = vpop.permute.xlu0 %320 }
 0x3d6   :  { %v325_v28 = vmul.f32 %v321_v26, %v315_v25  ;;  %v319_v29 = vpop.permute.xlu1 %318 }
 0x3d7   :  { %v324_v30 = vmul.f32 %v319_v29, %v308_v27 }
 0x3d8   :  { %332 = vrot.lane.b32.xlu0 %v325_v28, %s1026_s13 }
 0x3d9   :  { %330 = vrot.lane.b32.xlu1 %v324_v30, %s1026_s13 }
 0x3dd   :  { %334 = vrot.lane.b32.xlu1 %v1132_v44, %s1029_s0 }
 0x44a   :  { %v333_v12 = vpop.permute.xlu0 %332 }
 0x44b   :  { %v331_v10 = vpop.permute.xlu1 %330 }
 0x44c   :  { %937 = vmatprep.mubr.msk.f32.mxu0 %vm110_vm0, %v331_v10 }
 0x44d   :  { %938 = vmatmul.mubr.msk.f32.vlgmr.msra.gmra.mrb[2].mxu0 %vm110_vm0, %v333_v12 }
 0x44e   :  { %977 = vmatpush3.bf16.msk.msra.mxu0 %vm1146_vm3, %v972_v53  ;;  %vm780_vm3 = vcmask 1042304  }
 0x44f   :  { %v335_v31 = vpop.permute.xlu1 %334 }
 0x520   :  { %v939_v32 = vpop.f32.mrb[2].mxu0 }
 0x521   :  { %v416_v33 = vadd.f32 %v939_v32, %v335_v31  ;;  %v410_v34 = vpop.f32.mrb[3].mxu0 }
 0x522   :  { %v411_v35 = vadd.f32 %v410_v34, %v335_v31 }
 0x523   :  { %v1193_v36 = vadd.f32 %v416_v33, %v1121_v40 }
 0x524   :  { %v1196_v37 = vadd.f32 %v411_v35, %v1123_v41 }
 0x525   :  { %v424_v38 = vsel %vm110_vm0, %v1193_v36, 0.0 }
 0x526   :  { %425 = vadd.xlane.f32.xlu1 %v424_v38  ;;  %v421_v39 = vsel %vm110_vm0, %v1196_v37, 0.0 }
 0x527   :  { %422 = vadd.xlane.f32.xlu0 %v421_v39 }
 0x537   :  { %447 = vrot.lane.b32.xlu1 %v1132_v44, %s1026_s13 }
 0x53b   :  { %459 = vrot.lane.b32.xlu1 %v1132_v44, %s1031_s16 }
 0x53f   :  { %637 = vrot.lane.b32.xlu1 %v1132_v44, %s1030_s1 }
 0x5b3   :  { %v426_v40 = vpop.xlane.xlu1 %425 }
 0x5b4   :  { %v428_v41 = vmul.f32 0.1, %v426_v40  ;;  %v423_v42 = vpop.xlane.xlu0 %422 }
 0x5b5   :  { %v427_v43 = vmul.f32 0.1, %v423_v42 }
 0x5b6   :  { %v430_v45 = vsub.f32 %v1193_v36, %v428_v41  ;;  %v1043_v41 = vmov 1983009808  }
 0x5b7   :  { %v429_v46 = vsub.f32 %v1196_v37, %v427_v43  ;;  %v448_v63 = vpop.permute.xlu1 %447  ;;  %v727_v42 = vunpack.c.l.s4 %v1043_v41 }
 0x5b8   :  { %v432_v49 = vmul.f32 %v430_v45, %v430_v45 }
 0x5b9   :  { %v431_v47 = vmul.f32 %v429_v46, %v429_v46 }
 0x5ba   :  { %v436_v50 = vsel %vm110_vm0, %v432_v49, 0.0  ;;  %v728_v49 = vunpack.c.0.s8 %v727_v42 }
 0x5bb   :  { %v433_v48 = vsel %vm110_vm0, %v431_v47, 0.0  ;;  %v460_v14 = vpop.permute.xlu1 %459  ;;  %v711_v47 = vld [vmem:[%s1301_s6] sm:$0xff] }
 0x5bc   :  { %434 = vadd.xlane.f32.xlu0 %v433_v48 }
 0x5bf   :  { %v638_v22 = vpop.permute.xlu1 %637 }
 0x5c0   :  { %437 = vadd.xlane.f32.xlu0 %v436_v50 }
 0x5d6   :  { %452 = vrot.lane.b32.xlu0 %v1132_v44, %s1028_s15  ;;  %v549_v44 = vld [vmem:[%s1300_s5 + $0x8] sm:$0xff]  ;;  %s1037_s5 = smov 10  }
 0x5d7   :  { %v978_v55 = vpack.c.bf16 %v549_v44, %v548_v54 }
 0x5d9   :  { %979 = vmatprep.subr.bf16.mxu1 %v978_v55 }
 0x5da   :  { %981 = vmatpush3.bf16.msra.mxu1 %v978_v55 }
 0x5db   :  { %983 = vmatprep.subr.bf16.mxu1 %v982_v11 }
 0x5de   :  { %985 = vmatpush3.bf16.msra.mxu1 %v982_v11 }
 0x5df   :  { %955 = vmatprep.subr.mxu1 %v552_v13 }
 0x5e2   :  { %956 = vmatpush3.msra.mxu1 %v552_v13 }
 0x649   :  { %v435_v56 = vpop.xlane.xlu0 %434 }
 0x64a   :  { %v439_v57 = vmul.f32 0.1, %v435_v56 }
 0x64c   :  { %v441_v59 = vadd.f32 1e-05, %v439_v57 }
 0x64d   :  { %v438_v60 = vpop.xlane.xlu0 %437 }
 0x64e   :  { %1022 = vrsqrt.f32 %v441_v59  ;;  %v440_v61 = vmul.f32 0.1, %v438_v60 }
 0x650   :  { %v442_v62 = vadd.f32 1e-05, %v440_v61 }
 0x651   :  { %v453_v1 = vpop.permute.xlu0 %452 }
 0x652   :  { %1024 = vrsqrt.f32 %v442_v62 }
 0x658   :  { %v1023_v58 = vpop.eup %1022 }
 0x659   :  { %v445_v0 = vmul.f32 %v1023_v58, %v429_v46 }
 0x65b   :  { %v450_v2 = vmul.f32 %v448_v63, %v445_v0 }
 0x65c   :  { %v1025_v3 = vpop.eup %1024 }
 0x65d   :  { %v446_v4 = vmul.f32 %v1025_v3, %v430_v45  ;;  %v455_v5 = vadd.f32 %v453_v1, %v450_v2 }
 0x65f   :  { %v451_v6 = vmul.f32 %v448_v63, %v446_v4  ;;  %944 = vmatprep.mubr.msk.f32.mxu0 %vm110_vm0, %v455_v5 }
 0x661   :  { %v456_v7 = vadd.f32 %v453_v1, %v451_v6 }
 0x663   :  { %945 = vmatmul.mubr.msk.f32.vlgmr.msra.gmra.mrb[4].mxu0 %vm110_vm0, %v456_v7  ;;  %vm739_vm0 = vcmask 1042048  }
 0x664   :  { %vm1260_vm5 = vmor %vm740_vm1, %vm739_vm0  ;;  %vm823_vm0 = vcmask 779392  }
 0x736   :  { %v946_v15 = vpop.f32.mrb[4].mxu0 }
 0x737   :  { %v543_v16 = vadd.f32 %v946_v15, %v460_v14  ;;  %v537_v17 = vpop.f32.mrb[5].mxu0 }
 0x738   :  { %v538_v18 = vadd.f32 %v537_v17, %v460_v14 }
 0x739   :  { %v547_v20 = vmax.f32 %v543_v16, 0.0 }
 0x73a   :  { %v546_v19 = vmax.f32 %v538_v18, 0.0 }
 0x73c   :  { %957 = vmatprep.mubr.msk.f32.mxu1 %vm553_vm6, %v546_v19 }
 0x73d   :  { %958 = vmatmul.mubr.msk.f32.vlgmr.msra.gmra.mrb[0].mxu1 %vm553_vm6, %v547_v20  ;;  %vm777_vm6 = vcmask 916480  }
 0x810   :  { %v959_v21 = vpop.f32.mrb[0].mxu1 }
 0x811   :  { %v636_v23 = vadd.f32 %v959_v21, %v1193_v36  ;;  %v626_v24 = vpop.f32.mrb[1].mxu1  ;;  %v713_v36 = vlaneseq }
 0x812   :  { %v635_v25 = vadd.f32 %v626_v24, %v1196_v37 }
 0x813   :  { %v641_v26 = vadd.f32 %v638_v22, %v636_v23  ;;  %v714_v39 = vshrl.u32 %v713_v36, 7 }
 0x814   :  { %v640_v27 = vadd.f32 %v638_v22, %v635_v25 }
 0x815   :  { %682 = vrot.lane.b32.xlu1 %v641_v26, %s1037_s5  ;;  %680 = vst.msk [vmem:[#allocation2 + $0x1] sm:$0x1] %vm642_vm7, %v641_v26  ;;  %v763_v45 = vsub.s32 3, %v714_v39  ;;  %v722_v46 = vsub.s32 1, %v714_v39  ;;  %v715_v48 = vsub.s32 0, %v714_v39  ;;  %v745_v50 = vsub.s32 2, %v714_v39 }
 0x816   :  { %645 = vrot.lane.b32.xlu0 %v640_v27, %s1037_s5  ;;  %643 = vst.msk [vmem:[#allocation2] sm:$0x1] %vm642_vm7, %v640_v27  ;;  %v786_v51 = vsub.s32 4, %v714_v39  ;;  %v827_v55 = vsub.s32 6, %v714_v39  ;;  %v731_v56 = vsub.s32 %v728_v49, %v714_v39  ;;  %v850_v2 = vsub.s32 7, %v714_v39 }
 0x817   :  { %v764_v53 = vrot.slane %v711_v47, %v763_v45  ;;  %v723_v54 = vrot.slane %v711_v47, %v722_v46  ;;  %v869_v44 = vrot.slane %v712_v52, %v715_v48  ;;  %v746_v57 = vrot.slane %v711_v47, %v745_v50 }
 0x818   :  { %v787_v59 = vrot.slane %v711_v47, %v786_v51  ;;  %v716_v61 = vrot.slane %v711_v47, %v715_v48  ;;  %v875_v63 = vrot.slane %v712_v52, %v722_v46  ;;  %v828_v1 = vrot.slane %v711_v47, %v827_v55 }
 0x819   :  { %686 = vrot.lane.b32.xlu1 %v641_v26, %s1036_s28  ;;  %v809_v3 = vsub.s32 5, %v714_v39  ;;  %v851_v9 = vrot.slane %v711_v47, %v850_v2  ;;  %vm759_vm7 = vcmask 910592  }
 0x81a   :  { %650 = vrot.lane.b32.xlu0 %v640_v27, %s1036_s28 }
 0x81b   :  { %v810_v11 = vrot.slane %v711_v47, %v809_v3 }
 0x81d   :  { %690 = vrot.lane.b32.xlu1 %v641_v26, %s1038_s17 }
 0x81e   :  { %655 = vrot.lane.b32.xlu0 %v640_v27, %s1038_s17 }
 0x821   :  { %694 = vrot.lane.b32.xlu1 %v641_v26, %s1039_s19 }
 0x822   :  { %660 = vrot.lane.b32.xlu0 %v640_v27, %s1039_s19 }
 0x825   :  { %698 = vrot.lane.b32.xlu1 %v641_v26, %s1040_s20 }
 0x826   :  { %665 = vrot.lane.b32.xlu0 %v640_v27, %s1040_s20 }
 0x829   :  { %702 = vrot.lane.b32.xlu1 %v641_v26, %s1041_s21 }
 0x82a   :  { %670 = vrot.lane.b32.xlu0 %v640_v27, %s1041_s21 }
 0x82d   :  { %706 = vrot.lane.b32.xlu1 %v641_v26, %s1042_s7 }
 0x82e   :  { %675 = vrot.lane.b32.xlu0 %v640_v27, %s1042_s7 }
 0x887   :  { %v683_v28 = vpop.permute.xlu1 %682 }
 0x888   :  { %685 = vst.msk [vmem:[#allocation2] sm:$0x2] %vm648_vm8, %v683_v28  ;;  %v646_v29 = vpop.permute.xlu0 %645 }
 0x889   :  { %649 = vst.msk [vmem:[#allocation2 - $0x1] sm:$0x2] %vm648_vm8, %v646_v29  ;;  %vm803_vm8 = vcmask 1041920  }
 0x88b   :  { %v687_v30 = vpop.permute.xlu1 %686 }
 0x88c   :  { %689 = vst.msk [vmem:[#allocation2 - $0x1] sm:$0x4] %vm653_vm9, %v687_v30  ;;  %v651_v10 = vpop.permute.xlu0 %650 }
 0x88d   :  { %654 = vst.msk [vmem:[#allocation2 - $0x2] sm:$0x4] %vm653_vm9, %v651_v10  ;;  %vm804_vm9 = vcmask 125954  }
 0x88f   :  { %v691_v12 = vpop.permute.xlu1 %690 }
 0x890   :  { %693 = vst.msk [vmem:[#allocation2 - $0x2] sm:$0x8] %vm658_vm10, %v691_v12  ;;  %v656_v31 = vpop.permute.xlu0 %655 }
 0x891   :  { %659 = vst.msk [vmem:[#allocation2 - $0x3] sm:$0x8] %vm658_vm10, %v656_v31  ;;  %vm782_vm10 = vmor %vm781_vm4, %vm780_vm3  ;;  %vm864_vm3 = vcmask 1041792  }
 0x893   :  { %v695_v32 = vpop.permute.xlu1 %694 }
 0x894   :  { %697 = vst.msk [vmem:[#allocation2 - $0x3] sm:$0x10] %vm663_vm11, %v695_v32  ;;  %v661_v33 = vpop.permute.xlu0 %660 }
 0x895   :  { %664 = vst.msk [vmem:[#allocation2 - $0x4] sm:$0x10] %vm663_vm11, %v661_v33  ;;  %vm800_vm11 = vcmask 523264  }
 0x897   :  { %v699_v34 = vpop.permute.xlu1 %698 }
 0x898   :  { %701 = vst.msk [vmem:[#allocation2 - $0x4] sm:$0x20] %vm668_vm12, %v699_v34  ;;  %v666_v35 = vpop.permute.xlu0 %665 }
 0x899   :  { %669 = vst.msk [vmem:[#allocation2 - $0x5] sm:$0x20] %vm668_vm12, %v666_v35  ;;  %vm805_vm12 = vmor %vm804_vm9, %vm803_vm8 }
 0x89b   :  { %v703_v37 = vpop.permute.xlu1 %702 }
 0x89c   :  { %705 = vst.msk [vmem:[#allocation2 - $0x5] sm:$0x40] %vm673_vm13, %v703_v37  ;;  %v671_v38 = vpop.permute.xlu0 %670 }
 0x89d   :  { %674 = vst.msk [vmem:[#allocation2 - $0x6] sm:$0x40] %vm673_vm13, %v671_v38  ;;  %vm844_vm13 = vcmask 1042176  }
 0x89f   :  { %v707_v40 = vpop.permute.xlu1 %706 }
 0x8a0   :  { %709 = vst.msk [vmem:[#allocation2 - $0x6] sm:$0x80] %vm678_vm14, %v707_v40  ;;  %v676_v43 = vpop.permute.xlu0 %675 }
 0x8a1   :  { %679 = vst.msk [vmem:[#allocation2 - $0x7] sm:$0x80] %vm678_vm14, %v676_v43  ;;  %vm845_vm14 = vcmask 388098  }
 0x8a2   :  { %vm846_vm1 = vmor %vm845_vm14, %vm844_vm13 }
 0x8a8   :  { %v710_v60 = vld [vmem:[#allocation2] sm:$0x3] }
 0x8a9   :  { %v765_v62 = vmul.f32 %v764_v53, %v710_v60  ;;  %v724_v58 = vmul.f32 %v723_v54, %v710_v60  ;;  %v870_v0 = vmul.f32 %v869_v44, %v710_v60  ;;  %v747_v6 = vmul.f32 %v746_v57, %v710_v60 }
 0x8aa   :  { %v788_v7 = vmul.f32 %v787_v59, %v710_v60  ;;  %v717_v8 = vmul.f32 %v716_v61, %v710_v60  ;;  %v876_v15 = vmul.f32 %v875_v63, %v710_v60  ;;  %v829_v16 = vmul.f32 %v828_v1, %v710_v60 }
 0x8ab   :  { %v773_v4 = vrot.slane %v765_v62, %v731_v56  ;;  %v732_v5 = vrot.slane %v724_v58, %v731_v56  ;;  %871 = vst.msk [vmem:[%s1302_s8 + $0xa] sm:$0x3] %vm718_vm15, %v870_v0  ;;  %v755_v13 = vrot.slane %v747_v6, %v731_v56  ;;  %v852_v19 = vmul.f32 %v851_v9, %v710_v60 }
 0x8ac   :  { %v796_v14 = vrot.slane %v788_v7, %v731_v56  ;;  %719 = vst.msk [vmem:[%s1302_s8] sm:$0x3] %vm718_vm15, %v717_v8  ;;  %v884_v17 = vrot.slane %v876_v15, %v731_v56  ;;  %v837_v18 = vrot.slane %v829_v16, %v731_v56  ;;  %v811_v20 = vmul.f32 %v810_v11, %v710_v60 }
 0x8ad   :  { %774 = vrot.lane.b32.xlu1 %v773_v4, %s1044_s26  ;;  %733 = vrot.lane.b32.xlu0 %v732_v5, %s1045_s27  ;;  %v860_v21 = vrot.slane %v852_v19, %v731_v56  ;;  %vm841_vm15 = vcmask 785408  }
 0x8ae   :  { %v819_v22 = vrot.slane %v811_v20, %v731_v56 }
 0x8b1   :  { %756 = vrot.lane.b32.xlu1 %v755_v13, %s1046_s29  ;;  %797 = vrot.lane.b32.xlu0 %v796_v14, %s1047_s30 }
 0x8b5   :  { %885 = vrot.lane.b32.xlu1 %v884_v17, %s1045_s27  ;;  %838 = vrot.lane.b32.xlu0 %v837_v18, %s1048_s9 }
 0x8b9   :  { %861 = vrot.lane.b32.xlu1 %v860_v21, %s1033_s18  ;;  %820 = vrot.lane.b32.xlu0 %v819_v22, %s1049_s10 }
 0x91f   :  { %v775_v23 = vpop.permute.xlu1 %774  ;;  %v734_v24 = vpop.permute.xlu0 %733 }
 0x920   :  { %v776_v25 = vrot.slane %v775_v23, 6  ;;  %v735_v27 = vrot.slane %v734_v24, 6 }
 0x922   :  { %v737_v28 = vsel %vm736_vm2, %v735_v27, %v734_v24  ;;  %v778_v10 = vsel %vm777_vm6, %v776_v25, %v775_v23 }
 0x923   :  { %742 = vst.msk [vmem:[%s1302_s8] sm:$0xf] %vm1260_vm5, %v737_v28  ;;  %v757_v29 = vpop.permute.xlu1 %756  ;;  %v798_v30 = vpop.permute.xlu0 %797 }
 0x924   :  { %760 = vst.msk [vmem:[%s1302_s8 + $0x2] sm:$0x3] %vm759_vm7, %v757_v29  ;;  %v799_v12 = vrot.slane %v798_v30, 6 }
 0x925   :  { %783 = vst.msk [vmem:[%s1302_s8 + $0x2] sm:$0xf] %vm782_vm10, %v778_v10 }
 0x926   :  { %v801_v31 = vsel %vm800_vm11, %v799_v12, %v798_v30 }
 0x927   :  { %806 = vst.msk [vmem:[%s1302_s8 + $0x4] sm:$0xf] %vm805_vm12, %v801_v31  ;;  %v886_v32 = vpop.permute.xlu1 %885  ;;  %v839_v33 = vpop.permute.xlu0 %838 }
 0x928   :  { %v887_v34 = vrot.slane %v886_v32, 6  ;;  %v840_v35 = vrot.slane %v839_v33, 6 }
 0x92a   :  { %v888_v36 = vsel %vm736_vm2, %v887_v34, %v886_v32  ;;  %v842_v38 = vsel %vm841_vm15, %v840_v35, %v839_v33 }
 0x92b   :  { %890 = vst.msk [vmem:[%s1302_s8 + $0xa] sm:$0xf] %vm1260_vm5, %v888_v36  ;;  %v821_v37 = vpop.permute.xlu0 %820  ;;  %v862_v39 = vpop.permute.xlu1 %861 }
 0x92c   :  { %824 = vst.msk [vmem:[%s1302_s8 + $0x6] sm:$0x3] %vm823_vm0, %v821_v37 }
 0x92d   :  { %847 = vst.msk [vmem:[%s1302_s8 + $0x6] sm:$0xf] %vm846_vm1, %v842_v38 }
 0x92e   :  { %865 = vst.msk [vmem:[%s1302_s8 + $0x8] sm:$0x3] %vm864_vm3, %v862_v39 }

</bundles_post_ra>
